<compile_context>
chip_gen: v7x
topology: tpu7x:2x2x1
jax: 0.10.0
libtpu: 0.0.40
codegen_flags: <defaults>
</compile_context>

<pallas_src>
import functools

import jax
import jax.numpy as jnp
from jax.experimental import pallas as pl
from jax.experimental.pallas import tpu as pltpu

DILATION = 2   # rate
KSIZE = 3
PAD = 2        # padding=2 with dilation=2, k=3 -> spatial size preserved


def _tap_offsets():
    """(di, dj) displacement of each of the 9 dilated-conv taps, (kh, kw) order."""
    taps = []
    for kh in range(KSIZE):
        di = kh * DILATION - PAD
        for kw in range(KSIZE):
            dj = kw * DILATION - PAD
            taps.append((di, dj))
    return taps


def segse_kernel(x_ref, mask_ref, w1_ref, b1_ref, w2_ref, b2_ref, out_ref, *, W):
    # x_ref   : (Cin,  B*H*W)   VMEM, lane-dense, batch folded into lanes
    # mask_ref: (9,    B*H*W)   VMEM, {0,1} f32 zero-pad validity per tap
    # w1_ref  : (Cmid, 9*Cin)   VMEM, columns ordered (tap-major, channel-minor)
    # b1_ref  : (Cmid, 1)       VMEM
    # w2_ref  : (Cout, Cmid)    VMEM
    # b2_ref  : (Cout, 1)       VMEM
    # out_ref : (Cout, B*H*W)   VMEM
    _, lanes = x_ref.shape
    x = x_ref[...].astype(jnp.float32)

    # Build the im2col slab T = (9*Cin, lanes): one lane-roll (XLU) + mask
    # multiply per tap, shared by every mid channel and every image in the
    # batch.  pltpu.roll follows the jnp.roll convention (rolled[l] = x[l - s]),
    # so shift = (-off) % lanes gives rolled[l] = x[l + off]; lanes that wrap
    # across image (or array) boundaries are exactly the lanes mask zeroes.
    taps = []
    for t, (di, dj) in enumerate(_tap_offsets()):
        off = di * W + dj
        if off == 0:
            taps.append(x)                                   # center tap, no pad
        else:
            rolled = pltpu.roll(x, shift=(-off) % lanes, axis=1)
            taps.append(rolled * mask_ref[t:t + 1, :])
    t_slab = jnp.concatenate(taps, axis=0)                   # (9*Cin, lanes)

    # Dilated 3x3 conv (Cin -> Cmid) and 1x1 conv (Cmid -> Cout): two tiny MXU
    # matmuls instead of scalar-broadcast VALU mul-adds.
    mid = jnp.dot(w1_ref[...], t_slab,
                  preferred_element_type=jnp.float32) + b1_ref[...]
    y = jnp.dot(w2_ref[...], mid,
                preferred_element_type=jnp.float32) + b2_ref[...]

    # Exact sigmoid via a single EUP tanh: sigmoid(y) = 0.5*tanh(0.5*y) + 0.5.
    out_ref[...] = (0.5 * jnp.tanh(0.5 * y) + 0.5).astype(out_ref.dtype)


def segse_block(x, w1, b1, w2, b2):
    """x: [B, Cin, H, W]; w1: [Cmid, Cin, 3, 3]; b1: [Cmid]; w2: [Cout, Cmid]; b2: [Cout]."""
    B, Cin, H, W = x.shape
    Cmid = b1.shape[0]
    Cout = b2.shape[0]
    HW = H * W
    lanes = B * HW  # 512 here — a clean multiple of 128, so all vld/vst are full-width

    # Lane-dense, batch-folded input slab: lane index = b*HW + (h*W + w).
    x_flat = x.reshape(B, Cin, HW).transpose(1, 0, 2).reshape(Cin, lanes)

    # Precomputed per-tap zero-padding validity masks, tiled across the batch.
    row = jnp.arange(HW, dtype=jnp.int32) // W
    col = jnp.arange(HW, dtype=jnp.int32) % W
    mask_rows = []
    for di, dj in _tap_offsets():
        valid = ((row + di >= 0) & (row + di < H)
                 & (col + dj >= 0) & (col + dj < W))
        mask_rows.append(valid.astype(jnp.float32))
    mask = jnp.tile(jnp.stack(mask_rows, axis=0), (1, B))    # (9, lanes)

    # Weights in matmul-ready layout. T rows are ordered (tap-major,
    # channel-minor): row = (kh*3 + kw)*Cin + c, so w1 -> (Cmid, 9*Cin) via
    # a (0, kh, kw, c) transpose.
    w1_2d = jnp.transpose(w1, (0, 2, 3, 1)).reshape(Cmid, KSIZE * KSIZE * Cin)
    b1_2d = b1.reshape(Cmid, 1).astype(jnp.float32)
    w2_2d = w2.reshape(Cout, Cmid)
    b2_2d = b2.reshape(Cout, 1).astype(jnp.float32)

    kernel = functools.partial(segse_kernel, W=W)
    vmem = lambda: pl.BlockSpec(memory_space=pltpu.MemorySpace.VMEM)
    out_flat = pl.pallas_call(
        kernel,
        out_shape=jax.ShapeDtypeStruct((Cout, lanes), x.dtype),
        in_specs=[vmem() for _ in range(6)],
        out_specs=vmem(),
    )(x_flat, mask, w1_2d, b1_2d, w2_2d, b2_2d)

    return out_flat.reshape(Cout, B, HW).transpose(1, 0, 2).reshape(B, Cout, H, W)


def segse_ref(x, w1, b1, w2, b2):
    """Pure-JAX reference matching PyTorch SegSEBlock.forward (f32-accurate)."""
    hi = jax.lax.Precision.HIGHEST
    y = jax.lax.conv_general_dilated(
        x, w1, window_strides=(1, 1),
        padding=((PAD, PAD), (PAD, PAD)),
        rhs_dilation=(DILATION, DILATION),
        dimension_numbers=("NCHW", "OIHW", "NCHW"),
        precision=hi)
    y = y + b1[None, :, None, None]
    y = jax.lax.conv_general_dilated(
        y, w2[:, :, None, None], (1, 1), "VALID",
        dimension_numbers=("NCHW", "OIHW", "NCHW"),
        precision=hi)
    y = y + b2[None, :, None, None]
    return jax.nn.sigmoid(y)


if __name__ == "__main__":
    B, Cin, H, W = 2, 4, 16, 16
    rate = 2
    Cmid = Cin // rate
    Cout = Cin

    key = jax.random.PRNGKey(0)
    kx, k1, k2, k3, k4 = jax.random.split(key, 5)

    x = jax.random.normal(kx, (B, Cin, H, W), dtype=jnp.float32)

    # Deterministic init mirroring PyTorch Conv2d default (uniform +/- 1/sqrt(fan_in)).
    fan1 = Cin * KSIZE * KSIZE
    fan2 = Cmid
    w1 = jax.random.uniform(k1, (Cmid, Cin, KSIZE, KSIZE), jnp.float32,
                            -1.0 / fan1 ** 0.5, 1.0 / fan1 ** 0.5)
    b1 = jax.random.uniform(k2, (Cmid,), jnp.float32,
                            -1.0 / fan1 ** 0.5, 1.0 / fan1 ** 0.5)
    w2 = jax.random.uniform(k3, (Cout, Cmid), jnp.float32,
                            -1.0 / fan2 ** 0.5, 1.0 / fan2 ** 0.5)
    b2 = jax.random.uniform(k4, (Cout,), jnp.float32,
                            -1.0 / fan2 ** 0.5, 1.0 / fan2 ** 0.5)

    out = jax.block_until_ready(segse_block(x, w1, b1, w2, b2))
    ref = jax.block_until_ready(segse_ref(x, w1, b1, w2, b2))

    assert out.shape == (B, Cout, H, W)
    err = float(jnp.max(jnp.abs(out - ref)))
    # Reference runs at Precision.HIGHEST; the kernel's MXU matmuls may run at
    # the TPU default (bf16-input) precision, which bounds the deviation of the
    # [0,1] sigmoid output by a few 1e-3 in the worst case. Anything structural
    # (wrong tap offset / mask / weight layout) would be O(0.1).
    assert err < 5e-3, f"max abs err = {err}"

    print("KERNEL_OK")
</pallas_src>

<mosaic_0001>
module attributes {stable_mosaic.version = 11 : i64} {
  func.func @segse_kernel(%arg0: memref<4x512xf32, #tpu.memory_space<vmem>>, %arg1: memref<9x512xf32, #tpu.memory_space<vmem>>, %arg2: memref<2x36xf32, #tpu.memory_space<vmem>>, %arg3: memref<2x1xf32, #tpu.memory_space<vmem>>, %arg4: memref<4x2xf32, #tpu.memory_space<vmem>>, %arg5: memref<4x1xf32, #tpu.memory_space<vmem>>, %arg6: memref<4x512xf32, #tpu.memory_space<vmem>>) attributes {dimension_semantics = [], scalar_prefetch = 0 : i64, scratch_operands = 0 : i64, tpu.core_type = #tpu.core_type<tc>} {
    %c0 = arith.constant 0 : index
    %c0_0 = arith.constant 0 : index
    %0 = vector.load %arg0[%c0, %c0_0] : memref<4x512xf32, #tpu.memory_space<vmem>>, vector<4x512xf32>
    %c34_i32 = arith.constant 34 : i32
    %1 = tpu.dynamic_rotate %0 by %c34_i32 dim 1 : vector<4x512xf32>, i32 -> vector<4x512xf32>
    %c0_1 = arith.constant 0 : index
    %c0_2 = arith.constant 0 : index
    %2 = vector.load %arg1[%c0_1, %c0_2] : memref<9x512xf32, #tpu.memory_space<vmem>>, vector<1x512xf32>
    %3 = vector.broadcast %2 : vector<1x512xf32> to vector<4x512xf32>
    %4 = arith.mulf %1, %3 : vector<4x512xf32>
    %c32_i32 = arith.constant 32 : i32
    %5 = tpu.dynamic_rotate %0 by %c32_i32 dim 1 : vector<4x512xf32>, i32 -> vector<4x512xf32>
    %c1 = arith.constant 1 : index
    %c0_3 = arith.constant 0 : index
    %6 = vector.load %arg1[%c1, %c0_3] : memref<9x512xf32, #tpu.memory_space<vmem>>, vector<1x512xf32>
    %7 = vector.broadcast %6 : vector<1x512xf32> to vector<4x512xf32>
    %8 = arith.mulf %5, %7 : vector<4x512xf32>
    %c30_i32 = arith.constant 30 : i32
    %9 = tpu.dynamic_rotate %0 by %c30_i32 dim 1 : vector<4x512xf32>, i32 -> vector<4x512xf32>
    %c2 = arith.constant 2 : index
    %c0_4 = arith.constant 0 : index
    %10 = vector.load %arg1[%c2, %c0_4] : memref<9x512xf32, #tpu.memory_space<vmem>>, vector<1x512xf32>
    %11 = vector.broadcast %10 : vector<1x512xf32> to vector<4x512xf32>
    %12 = arith.mulf %9, %11 : vector<4x512xf32>
    %c2_i32 = arith.constant 2 : i32
    %13 = tpu.dynamic_rotate %0 by %c2_i32 dim 1 : vector<4x512xf32>, i32 -> vector<4x512xf32>
    %c3 = arith.constant 3 : index
    %c0_5 = arith.constant 0 : index
    %14 = vector.load %arg1[%c3, %c0_5] : memref<9x512xf32, #tpu.memory_space<vmem>>, vector<1x512xf32>
    %15 = vector.broadcast %14 : vector<1x512xf32> to vector<4x512xf32>
    %16 = arith.mulf %13, %15 : vector<4x512xf32>
    %c510_i32 = arith.constant 510 : i32
    %17 = tpu.dynamic_rotate %0 by %c510_i32 dim 1 : vector<4x512xf32>, i32 -> vector<4x512xf32>
    %c5 = arith.constant 5 : index
    %c0_6 = arith.constant 0 : index
    %18 = vector.load %arg1[%c5, %c0_6] : memref<9x512xf32, #tpu.memory_space<vmem>>, vector<1x512xf32>
    %19 = vector.broadcast %18 : vector<1x512xf32> to vector<4x512xf32>
    %20 = arith.mulf %17, %19 : vector<4x512xf32>
    %c482_i32 = arith.constant 482 : i32
    %21 = tpu.dynamic_rotate %0 by %c482_i32 dim 1 : vector<4x512xf32>, i32 -> vector<4x512xf32>
    %c6 = arith.constant 6 : index
    %c0_7 = arith.constant 0 : index
    %22 = vector.load %arg1[%c6, %c0_7] : memref<9x512xf32, #tpu.memory_space<vmem>>, vector<1x512xf32>
    %23 = vector.broadcast %22 : vector<1x512xf32> to vector<4x512xf32>
    %24 = arith.mulf %21, %23 : vector<4x512xf32>
    %c480_i32 = arith.constant 480 : i32
    %25 = tpu.dynamic_rotate %0 by %c480_i32 dim 1 : vector<4x512xf32>, i32 -> vector<4x512xf32>
    %c7 = arith.constant 7 : index
    %c0_8 = arith.constant 0 : index
    %26 = vector.load %arg1[%c7, %c0_8] : memref<9x512xf32, #tpu.memory_space<vmem>>, vector<1x512xf32>
    %27 = vector.broadcast %26 : vector<1x512xf32> to vector<4x512xf32>
    %28 = arith.mulf %25, %27 : vector<4x512xf32>
    %c478_i32 = arith.constant 478 : i32
    %29 = tpu.dynamic_rotate %0 by %c478_i32 dim 1 : vector<4x512xf32>, i32 -> vector<4x512xf32>
    %c8 = arith.constant 8 : index
    %c0_9 = arith.constant 0 : index
    %30 = vector.load %arg1[%c8, %c0_9] : memref<9x512xf32, #tpu.memory_space<vmem>>, vector<1x512xf32>
    %31 = vector.broadcast %30 : vector<1x512xf32> to vector<4x512xf32>
    %32 = arith.mulf %29, %31 : vector<4x512xf32>
    %33 = tpu.concatenate %4, %8, %12, %16, %0, %20, %24, %28, %32 in 0 : vector<4x512xf32>, vector<4x512xf32>, vector<4x512xf32>, vector<4x512xf32>, vector<4x512xf32>, vector<4x512xf32>, vector<4x512xf32>, vector<4x512xf32>, vector<4x512xf32> -> vector<36x512xf32>
    %c0_10 = arith.constant 0 : index
    %c0_11 = arith.constant 0 : index
    %34 = vector.load %arg2[%c0_10, %c0_11] : memref<2x36xf32, #tpu.memory_space<vmem>>, vector<2x36xf32>
    %cst = arith.constant dense<0.000000e+00> : vector<2x512xf32>
    %35 = tpu.matmul %34, %33, %cst {dimension_numbers = #tpu.dot_dimension_numbers<[1], [0], [0], [1], [0, 0, 1, 1], [], []>} : vector<2x36xf32>, vector<36x512xf32>, vector<2x512xf32> -> vector<2x512xf32>
    %c0_12 = arith.constant 0 : index
    %c0_13 = arith.constant 0 : index
    %36 = vector.load %arg3[%c0_12, %c0_13] : memref<2x1xf32, #tpu.memory_space<vmem>>, vector<2x1xf32>
    %37 = vector.broadcast %36 : vector<2x1xf32> to vector<2x512xf32>
    %38 = arith.addf %35, %37 : vector<2x512xf32>
    %c0_14 = arith.constant 0 : index
    %c0_15 = arith.constant 0 : index
    %39 = vector.load %arg4[%c0_14, %c0_15] : memref<4x2xf32, #tpu.memory_space<vmem>>, vector<4x2xf32>
    %cst_16 = arith.constant dense<0.000000e+00> : vector<4x512xf32>
    %40 = tpu.matmul %39, %38, %cst_16 {dimension_numbers = #tpu.dot_dimension_numbers<[1], [0], [0], [1], [0, 0, 1, 1], [], []>} : vector<4x2xf32>, vector<2x512xf32>, vector<4x512xf32> -> vector<4x512xf32>
    %c0_17 = arith.constant 0 : index
    %c0_18 = arith.constant 0 : index
    %41 = vector.load %arg5[%c0_17, %c0_18] : memref<4x1xf32, #tpu.memory_space<vmem>>, vector<4x1xf32>
    %42 = vector.broadcast %41 : vector<4x1xf32> to vector<4x512xf32>
    %43 = arith.addf %40, %42 : vector<4x512xf32>
    %cst_19 = arith.constant 5.000000e-01 : f32
    %44 = vector.broadcast %cst_19 : f32 to vector<4x512xf32>
    %45 = arith.mulf %44, %43 : vector<4x512xf32>
    %46 = math.tanh %45 : vector<4x512xf32>
    %cst_20 = arith.constant 5.000000e-01 : f32
    %47 = vector.broadcast %cst_20 : f32 to vector<4x512xf32>
    %48 = arith.mulf %47, %46 : vector<4x512xf32>
    %cst_21 = arith.constant 5.000000e-01 : f32
    %49 = vector.broadcast %cst_21 : f32 to vector<4x512xf32>
    %50 = arith.addf %48, %49 : vector<4x512xf32>
    %c0_22 = arith.constant 0 : index
    %c0_23 = arith.constant 0 : index
    %51 = vector.load %arg6[%c0_22, %c0_23] : memref<4x512xf32, #tpu.memory_space<vmem>>, vector<4x512xf32>
    tpu.vector_store %arg6[%c0_22, %c0_23], %50 {strides = array<i32>} : memref<4x512xf32, #tpu.memory_space<vmem>>, vector<4x512xf32>,
    return
  }
}

</mosaic_0001>

<bundles_post_ra>
// kernel: tpu_custom_call.1
= control target key start
LH: loop header
LB: loop body
LE: loop exit
PB: predicated region body
PF: predicated region fallthrough
CT: control target
= control target key end

     0   :  { %11 = vsyncpa [#allocation3], 0  ;;  %s1225_s0 = inlined_call_operand.hbm [shape: f32[4,512], index: 0, kind: input, shape index: {}]   ;;  %s1226_s1 = inlined_call_operand.hbm [shape: f32[9,512], index: 1, kind: input, shape index: {}]   ;;  %s1227_s2 = inlined_call_operand.vmem [shape: f32[2,36], index: 2, kind: input, shape index: {}]   ;;  %s1228_s3 = inlined_call_operand.vmem [shape: f32[2,1], index: 3, kind: input, shape index: {}]   ;;  %s1229_s4 = inlined_call_operand.vmem [shape: f32[4,2], index: 4, kind: input, shape index: {}]   ;;  %s1230_s5 = inlined_call_operand.vmem [shape: f32[4,1], index: 5, kind: input, shape index: {}]   ;;  %s1231_s6 = inlined_call_operand.hbm [shape: f32[4,512], index: 6, kind: output, shape index: {}]  }
   0x1   :  { %12 = vsyncpa [#allocation6], 0 }
   0x2   :  { %13 = vsyncpa [#allocation4], 0  ;;  %s943_s21 = smov [#allocation2]   ;;  %s944_s23 = smov [#allocation5]  }
   0x3   :  { %s20_s22 = sshll.u32 %s943_s21, 4  ;;  %s29_s24 = sshll.u32 %s944_s23, 4  ;;  %s21_s22 = int_to_ptr.vmem [resolvable:$true] %s20_s22  ;;  %s992_s24 = int_to_ptr.vmem [resolvable:$true] %s29_s24 }
   0x4   :  { %s871_s27 = scalar_lea.hbm %s1225_s0, 256 }
   0x5   :  { %p872_p0 = scmp.ne.s32.totalorder %s1225_s0, %s871_s27  ;;  %p875_p1 = scmp.lt.u32.totalorder %s871_s27, %s1225_s0 }
   0x7   :  { %p877_p2 = pnand %p875_p1, %p872_p0 }
   0x9   :  { %880 = shalt.err (!%p877_p2)
}
   0xa   :  { %s881_s8 = scalar_lea.vmem %s21_s22, 256  ;;  %p886_p4 = scmp.lt.s32.totalorder %s21_s22, %s21_s22 }
   0xb   :  { %p882_p3 = scmp.ne.s32.totalorder %s21_s22, %s881_s8  ;;  %p887_p5 = scmp.lt.s32.totalorder %s881_s8, %s881_s8 }
   0xd   :  { %p888_p6 = por %p887_p5, %p886_p4 }
   0xf   :  { %p889_p7 = pnand %p888_p6, %p882_p3 }
  0x11   :  { %892 = shalt.err (!%p889_p7)
}
  0x12   :  { %23 = dma.hbm_to_vmem [thread:$0]  %s1225_s0, 256, %s21_s22, [#allocation3]  }
  0x13   :  { %s893_s13 = scalar_lea.hbm %s1226_s1, 1024 }
  0x14   :  { %p894_p8 = scmp.ne.s32.totalorder %s1226_s1, %s893_s13  ;;  %p897_p9 = scmp.lt.u32.totalorder %s893_s13, %s1226_s1 }
  0x16   :  { %p899_p10 = pnand %p897_p9, %p894_p8 }
  0x18   :  { %902 = shalt.err (!%p899_p10)
}
  0x19   :  { %s903_s18 = scalar_lea.vmem %s992_s24, 1024  ;;  %p908_p12 = scmp.lt.s32.totalorder %s992_s24, %s992_s24 }
  0x1a   :  { %p904_p11 = scmp.ne.s32.totalorder %s992_s24, %s903_s18  ;;  %p909_p13 = scmp.lt.s32.totalorder %s903_s18, %s903_s18 }
  0x1c   :  { %p910_p0 = por %p909_p13, %p908_p12 }
  0x1e   :  { %p911_p1 = pnand %p910_p0, %p904_p11 }
  0x20   :  { %914 = shalt.err (!%p911_p1)
}
  0x21   :  { %s945_s0 = smov 512   ;;  %s946_s19 = smov 32  }
  0x22   :  { %35 = dma.hbm_to_vmem [thread:$0]  %s1226_s1, 1024, %s992_s24, [#allocation6], %s945_s0, %s945_s0, %s946_s19  }
  0x23   :  { %937 = dma.done.wait [#allocation3], 256  }
  0x24   :  { %938 = vsyncadd [#allocation3], 4294967040 }
  0x25   :  { %939 = dma.done.wait [#allocation6], 1024  }
  0x26   :  { %940 = vsyncadd [#allocation6], 4294966272  ;;  %v1023_v0 = vld [vmem:[#allocation2 + $0x8] sm:$0xff]  ;;  %v1025_v1 = vld [vmem:[#allocation2] sm:$0xff]  ;;  %s947_s22 = smov 2   ;;  %s948_s1 = smov 34   ;;  %v66_v9 = vlaneseq }
  0x27   :  { %103 = vrot.lane.b32.xlu1 %v1023_v0, %s946_s19  ;;  %99 = vrot.lane.b32.xlu0 %v1025_v1, %s946_s19  ;;  %v1031_v2 = vcombine.high %v1023_v0, %v1023_v0  ;;  %v1037_v3 = vcombine.high %v1025_v1, %v1025_v1  ;;  %s949_s23 = smov 30   ;;  %s950_s24 = smov 126   ;;  %v953_v4 = vmov 0.0   ;;  %v954_v5 = vmov 0   ;;  %v445_v6 = vld [vmem:[%s1228_s3] sm:$0x3] }
  0x28   :  { %s951_s25 = smov 96   ;;  %s952_s26 = smov 98   ;;  %531 = vmatprep.mubr.f32.mxu0 %v953_v4  ;;  %602 = vmatprep.mubr.f32.mxu1 %v953_v4  ;;  %v76_v12 = vshrl.u32 %v66_v9, 7  ;;  %v1072_v15 = vand.u32 127, %v66_v9  ;;  %vm427_vm3 = vcmask 1043456   ;;  %vm451_vm9 = vcmask 293888  }
  0x29   :  { %859 = vset.pattern.permute.xlu0 %v954_v5  ;;  %860 = vset.pattern.permute.xlu1 %v954_v5  ;;  %s955_s27 = smov 94   ;;  %v113_v18 = vld [vmem:[#allocation5 + $0x1] ss:$8 sm:$0xf]  ;;  %vm620_vm10 = vcmask 1041408   ;;  %vm616_vm11 = vcmask 15360  }
  0x2a   :  { %v1074_v16 = vsub.s32 0, %v76_v12  ;;  %v1076_v17 = vsub.s32 3, %v76_v12  ;;  %v1078_v19 = vsub.s32 1, %v76_v12  ;;  %v1080_v20 = vsub.s32 2, %v76_v12 }
  0x2b   :  { %105 = vrot.lane.b32.xlu1 %v1031_v2, %s946_s19  ;;  %179 = vrot.lane.b32.xlu0 %v1025_v1, %s947_s22  ;;  %v193_v23 = vld [vmem:[#allocation5 + $0x3] ss:$8 sm:$0xf]  ;;  %v73_v24 = vld [vmem:[#allocation5] ss:$8 sm:$0xf] }
  0x2c   :  { %vm107_vm0 = vcmp.lt.s32.totalorder %v1072_v15, 32  ;;  %v118_v25 = vrot.slane %v113_v18, %v1074_v16  ;;  %v130_v26 = vrot.slane %v113_v18, %v1076_v17  ;;  %vm187_vm1 = vcmp.lt.s32.totalorder %v1072_v15, 2  ;;  %v153_v36 = vld [vmem:[#allocation5 + $0x2] ss:$8 sm:$0xf] }
  0x2d   :  { %v202_v27 = vrot.slane %v193_v23, %v1078_v19  ;;  %v122_v28 = vrot.slane %v113_v18, %v1078_v19  ;;  %v126_v29 = vrot.slane %v113_v18, %v1080_v20  ;;  %v198_v30 = vrot.slane %v193_v23, %v1074_v16 }
  0x2e   :  { %v206_v33 = vrot.slane %v193_v23, %v1080_v20  ;;  %v210_v34 = vrot.slane %v193_v23, %v1076_v17  ;;  %vm68_vm2 = vcmp.lt.s32.totalorder %v1072_v15, 34  ;;  %v82_v35 = vrot.slane %v73_v24, %v1078_v19 }
  0x2f   :  { %181 = vrot.lane.b32.xlu1 %v1037_v3, %s947_s22  ;;  %101 = vrot.lane.b32.xlu0 %v1037_v3, %s946_s19  ;;  %v78_v39 = vrot.slane %v73_v24, %v1074_v16  ;;  %v86_v42 = vrot.slane %v73_v24, %v1080_v20  ;;  %v90_v43 = vrot.slane %v73_v24, %v1076_v17  ;;  %vm147_vm4 = vcmp.lt.s32.totalorder %v1072_v15, 30 }
  0x30   :  { %v162_v48 = vrot.slane %v153_v36, %v1078_v19  ;;  %v158_v55 = vrot.slane %v153_v36, %v1074_v16  ;;  %v166_v56 = vrot.slane %v153_v36, %v1080_v20  ;;  %v170_v60 = vrot.slane %v153_v36, %v1076_v17 }
  0x31   :  { %vm227_vm5 = vcmp.lt.s32.totalorder %v1072_v15, 126  ;;  %vm307_vm6 = vcmp.lt.s32.totalorder %v1072_v15, 96  ;;  %vm267_vm7 = vcmp.lt.s32.totalorder %v1072_v15, 98  ;;  %vm347_vm8 = vcmp.lt.s32.totalorder %v1072_v15, 94  ;;  %v610_v15 = vld [vmem:[%s1230_s5] sm:$0xf] }
  0x33   :  { %185 = vrot.lane.b32.xlu1 %v1031_v2, %s947_s22  ;;  %183 = vrot.lane.b32.xlu0 %v1023_v0, %s947_s22 }
  0x37   :  { %60 = vrot.lane.b32.xlu1 %v1037_v3, %s948_s1  ;;  %58 = vrot.lane.b32.xlu0 %v1025_v1, %s948_s1 }
  0x3b   :  { %64 = vrot.lane.b32.xlu1 %v1031_v2, %s948_s1  ;;  %62 = vrot.lane.b32.xlu0 %v1023_v0, %s948_s1 }
  0x3f   :  { %141 = vrot.lane.b32.xlu1 %v1037_v3, %s949_s23  ;;  %139 = vrot.lane.b32.xlu0 %v1025_v1, %s949_s23 }
  0x43   :  { %145 = vrot.lane.b32.xlu1 %v1031_v2, %s949_s23  ;;  %143 = vrot.lane.b32.xlu0 %v1023_v0, %s949_s23 }
  0x47   :  { %221 = vrot.lane.b32.xlu1 %v1037_v3, %s950_s24  ;;  %219 = vrot.lane.b32.xlu0 %v1025_v1, %s950_s24 }
  0x4b   :  { %225 = vrot.lane.b32.xlu1 %v1031_v2, %s950_s24  ;;  %223 = vrot.lane.b32.xlu0 %v1023_v0, %s950_s24 }
  0x4f   :  { %301 = vrot.lane.b32.xlu1 %v1037_v3, %s951_s25  ;;  %299 = vrot.lane.b32.xlu0 %v1025_v1, %s951_s25 }
  0x53   :  { %305 = vrot.lane.b32.xlu1 %v1031_v2, %s951_s25  ;;  %303 = vrot.lane.b32.xlu0 %v1023_v0, %s951_s25 }
  0x57   :  { %261 = vrot.lane.b32.xlu1 %v1037_v3, %s952_s26  ;;  %259 = vrot.lane.b32.xlu0 %v1025_v1, %s952_s26 }
  0x5b   :  { %265 = vrot.lane.b32.xlu1 %v1031_v2, %s952_s26  ;;  %263 = vrot.lane.b32.xlu0 %v1023_v0, %s952_s26 }
  0x5f   :  { %341 = vrot.lane.b32.xlu1 %v1037_v3, %s955_s27  ;;  %339 = vrot.lane.b32.xlu0 %v1025_v1, %s955_s27 }
  0x63   :  { %345 = vrot.lane.b32.xlu1 %v1031_v2, %s955_s27  ;;  %343 = vrot.lane.b32.xlu0 %v1023_v0, %s955_s27 }
  0x67   :  { %448 = vperm.xlu0 %859, %v445_v6   ;;  %613 = vperm.xlu1 %860, %v610_v15  }
  0x99   :  { %v104_v7 = vpop.permute.xlu1 %103  ;;  %v100_v8 = vpop.permute.xlu0 %99 }
  0x9d   :  { %v106_v10 = vpop.permute.xlu1 %105  ;;  %v180_v11 = vpop.permute.xlu0 %179 }
  0x9e   :  { %v108_v37 = vsel %vm107_vm0, %v104_v7, %v106_v10  ;;  %v111_v38 = vsel %vm107_vm0, %v106_v10, %v100_v8 }
  0x9f   :  { %v135_v49 = vmul.f32 %v118_v25, %v111_v38  ;;  %v138_v50 = vmul.f32 %v130_v26, %v108_v37 }
  0xa1   :  { %v182_v13 = vpop.permute.xlu1 %181  ;;  %v102_v14 = vpop.permute.xlu0 %101  ;;  %v386_v9 = vrot.slane %v138_v50, 4 }
  0xa2   :  { %v190_v40 = vsel %vm187_vm1, %v180_v11, %v182_v13  ;;  %v110_v41 = vsel %vm107_vm0, %v100_v8, %v102_v14  ;;  %v109_v44 = vsel %vm107_vm0, %v102_v14, %v104_v7  ;;  %v383_v8 = vrot.slane %v135_v49, 4 }
  0xa3   :  { %v216_v53 = vmul.f32 %v202_v27, %v190_v40  ;;  %v136_v54 = vmul.f32 %v122_v28, %v110_v41  ;;  %v137_v57 = vmul.f32 %v126_v29, %v109_v44 }
  0xa5   :  { %v186_v21 = vpop.permute.xlu1 %185  ;;  %v184_v22 = vpop.permute.xlu0 %183  ;;  %v396_v12 = vrot.slane %v216_v53, 4 }
  0xa6   :  { %v191_v45 = vsel %vm187_vm1, %v186_v21, %v180_v11  ;;  %v189_v51 = vsel %vm187_vm1, %v182_v13, %v184_v22  ;;  %v188_v59 = vsel %vm187_vm1, %v184_v22, %v186_v21  ;;  %v384_v13 = vrot.slane %v136_v54, 4  ;;  %v313_v54 = vld [vmem:[#allocation5 + $0x7] ss:$8 sm:$0xf] }
  0xa7   :  { %v215_v58 = vmul.f32 %v198_v30, %v191_v45  ;;  %v217_v61 = vmul.f32 %v206_v33, %v189_v51  ;;  %v218_v14 = vmul.f32 %v210_v34, %v188_v59  ;;  %v385_v21 = vrot.slane %v137_v57, 4 }
  0xa9   :  { %v61_v31 = vpop.permute.xlu1 %60  ;;  %v59_v32 = vpop.permute.xlu0 %58  ;;  %v395_v22 = vrot.slane %v215_v58, 4  ;;  %v397_v25 = vrot.slane %v217_v61, 4 }
  0xaa   :  { %v71_v52 = vsel %vm68_vm2, %v59_v32, %v61_v31 }
  0xab   :  { %v96_v62 = vmul.f32 %v82_v35, %v71_v52  ;;  %v398_v35 = vrot.slane %v218_v14, 4  ;;  %v233_v52 = vld [vmem:[#allocation5 + $0x5] ss:$8 sm:$0xf] }
  0xac   :  { %v250_v57 = vrot.slane %v233_v52, %v1076_v17  ;;  %v242_v58 = vrot.slane %v233_v52, %v1078_v19  ;;  %v246_v59 = vrot.slane %v233_v52, %v1080_v20 }
  0xad   :  { %v65_v46 = vpop.permute.xlu1 %64  ;;  %v63_v47 = vpop.permute.xlu0 %62  ;;  %v429_v29 = vsel %vm427_vm3, %v96_v62, %v384_v13  ;;  %v326_v13 = vrot.slane %v313_v54, %v1080_v20 }
  0xae   :  { %v72_v63 = vsel %vm68_vm2, %v65_v46, %v59_v32  ;;  %v69_v5 = vsel %vm68_vm2, %v63_v47, %v65_v46  ;;  %v70_v10 = vsel %vm68_vm2, %v61_v31, %v63_v47 }
  0xaf   :  { %v95_v23 = vmul.f32 %v78_v39, %v72_v63  ;;  %v98_v24 = vmul.f32 %v90_v43, %v69_v5  ;;  %v97_v26 = vmul.f32 %v86_v42, %v70_v10  ;;  %v330_v63 = vrot.slane %v313_v54, %v1076_v17 }
  0xb1   :  { %v142_v6 = vpop.permute.xlu1 %141  ;;  %v140_v7 = vpop.permute.xlu0 %139  ;;  %v428_v39 = vsel %vm427_vm3, %v95_v23, %v383_v8  ;;  %v431_v40 = vsel %vm427_vm3, %v98_v24, %v386_v9  ;;  %v430_v45 = vsel %vm427_vm3, %v97_v26, %v385_v21  ;;  %v273_v8 = vld [vmem:[#allocation5 + $0x6] ss:$8 sm:$0xf] }
  0xb2   :  { %v150_v11 = vsel %vm147_vm4, %v140_v7, %v142_v6  ;;  %v278_v23 = vrot.slane %v273_v8, %v1074_v16 }
  0xb3   :  { %v176_v18 = vmul.f32 %v162_v48, %v150_v11 }
  0xb5   :  { %v146_v27 = vpop.permute.xlu1 %145  ;;  %v144_v28 = vpop.permute.xlu0 %143  ;;  %v433_v30 = vsel %vm427_vm3, %v176_v18, %v396_v12 }
  0xb6   :  { %v151_v31 = vsel %vm147_vm4, %v146_v27, %v140_v7  ;;  %v148_v32 = vsel %vm147_vm4, %v144_v28, %v146_v27  ;;  %v149_v33 = vsel %vm147_vm4, %v142_v6, %v144_v28  ;;  %v829_v34 = vpack.c.bf16 %v433_v30, %v429_v29 }
  0xb7   :  { %v175_v36 = vmul.f32 %v158_v55, %v151_v31  ;;  %v177_v37 = vmul.f32 %v166_v56, %v149_v33  ;;  %v178_v38 = vmul.f32 %v170_v60, %v148_v32  ;;  %v238_v56 = vrot.slane %v233_v52, %v1074_v16 }
  0xb8   :  { %830 = vmatprep.subr.bf16.mxu0 %v829_v34  ;;  %v318_v60 = vrot.slane %v313_v54, %v1074_v16  ;;  %v322_v6 = vrot.slane %v313_v54, %v1078_v19  ;;  %v290_v33 = vrot.slane %v273_v8, %v1076_v17  ;;  %v282_v34 = vrot.slane %v273_v8, %v1078_v19 }
  0xb9   :  { %v222_v41 = vpop.permute.xlu1 %221  ;;  %v220_v42 = vpop.permute.xlu0 %219  ;;  %v432_v43 = vsel %vm427_vm3, %v175_v36, %v395_v22  ;;  %v435_v44 = vsel %vm427_vm3, %v178_v38, %v398_v35  ;;  %v434_v46 = vsel %vm427_vm3, %v177_v37, %v397_v25  ;;  %v286_v35 = vrot.slane %v273_v8, %v1080_v20 }
  0xba   :  { %v831_v47 = vpack.c.bf16 %v432_v43, %v428_v39  ;;  %v837_v48 = vpack.c.bf16 %v435_v44, %v431_v40  ;;  %v839_v49 = vpack.c.bf16 %v434_v46, %v430_v45  ;;  %v230_v9 = vsel %vm227_vm5, %v220_v42, %v222_v41 }
  0xbb   :  { %v255_v24 = vmul.f32 %v238_v56, %v230_v9 }
  0xbc   :  { %832 = vmatpush1.bf16.msra.mxu0 %v831_v47  ;;  %838 = vmatprep.subr.bf16.mxu1 %v837_v48 }
  0xbd   :  { %v226_v50 = vpop.permute.xlu1 %225  ;;  %840 = vmatpush1.bf16.msra.mxu1 %v839_v49  ;;  %v224_v51 = vpop.permute.xlu0 %223  ;;  %v407_v39 = vrot.slane %v255_v24, 4 }
  0xbe   :  { %v231_v61 = vsel %vm227_vm5, %v226_v50, %v220_v42  ;;  %v229_v62 = vsel %vm227_vm5, %v222_v41, %v224_v51  ;;  %v228_v10 = vsel %vm227_vm5, %v224_v51, %v226_v50 }
  0xbf   :  { %v258_v18 = vmul.f32 %v250_v57, %v231_v61  ;;  %v256_v21 = vmul.f32 %v242_v58, %v229_v62  ;;  %v257_v25 = vmul.f32 %v246_v59, %v228_v10  ;;  %v353_v57 = vld [vmem:[#allocation5 + $0x20] ss:$8 sm:$0xf] }
  0xc0   :  { %v362_v8 = vrot.slane %v353_v57, %v1078_v19  ;;  %v366_v9 = vrot.slane %v353_v57, %v1080_v20  ;;  %v358_v10 = vrot.slane %v353_v57, %v1074_v16 }
  0xc1   :  { %v302_v53 = vpop.permute.xlu1 %301  ;;  %v300_v55 = vpop.permute.xlu0 %299  ;;  %v410_v36 = vrot.slane %v258_v18, 4  ;;  %v408_v37 = vrot.slane %v256_v21, 4  ;;  %v409_v40 = vrot.slane %v257_v25, 4  ;;  %v444_v18 = vld [vmem:[%s1227_s2] sm:$0x3] }
  0xc2   :  { %v310_v11 = vsel %vm307_vm6, %v300_v55, %v302_v53 }
  0xc3   :  { %v335_v26 = vmul.f32 %v318_v60, %v310_v11  ;;  %v439_v54 = vsel %vm427_vm3, %v1031_v2, %v410_v36  ;;  %v438_v61 = vsel %vm427_vm3, %v1023_v0, %v409_v40 }
  0xc5   :  { %v306_v5 = vpop.permute.xlu1 %305  ;;  %v304_v7 = vpop.permute.xlu0 %303  ;;  %v419_v41 = vrot.slane %v335_v26, 4 }
  0xc6   :  { %v311_v12 = vsel %vm307_vm6, %v306_v5, %v300_v55  ;;  %v309_v14 = vsel %vm307_vm6, %v302_v53, %v304_v7  ;;  %v308_v22 = vsel %vm307_vm6, %v304_v7, %v306_v5  ;;  %v437_v53 = vsel %vm427_vm3, %v1037_v3, %v408_v37 }
  0xc7   :  { %v338_v27 = vmul.f32 %v330_v63, %v311_v12  ;;  %v336_v30 = vmul.f32 %v322_v6, %v309_v14  ;;  %v337_v32 = vmul.f32 %v326_v13, %v308_v22  ;;  %v436_v3 = vsel %vm427_vm3, %v1025_v1, %v407_v39 }
  0xc8   :  { %v370_v6 = vrot.slane %v353_v57, %v1076_v17 }
  0xc9   :  { %v262_v28 = vpop.permute.xlu1 %261  ;;  %v260_v29 = vpop.permute.xlu0 %259  ;;  %v422_v42 = vrot.slane %v338_v27, 4  ;;  %v420_v45 = vrot.slane %v336_v30, 4  ;;  %v421_v49 = vrot.slane %v337_v32, 4  ;;  %v609_v30 = vld [vmem:[%s1229_s4] sm:$0xf]  ;;  %s956_s4 = smov [#allocation7]  }
  0xca   :  { %v270_v31 = vsel %vm267_vm7, %v260_v29, %v262_v28  ;;  %s807_s5 = sshll.u32 %s956_s4, 4  ;;  %s808_s5 = int_to_ptr.vmem [resolvable:$true] %s807_s5 }
  0xcb   :  { %v295_v38 = vmul.f32 %v278_v23, %v270_v31  ;;  %s915_s10 = scalar_lea.vmem %s808_s5, 256  ;;  %p920_p3 = scmp.lt.s32.totalorder %s808_s5, %s808_s5 }
  0xcc   :  { %p916_p2 = scmp.ne.s32.totalorder %s808_s5, %s915_s10  ;;  %p921_p4 = scmp.lt.s32.totalorder %s915_s10, %s915_s10 }
  0xcd   :  { %v266_v43 = vpop.permute.xlu1 %265  ;;  %v264_v44 = vpop.permute.xlu0 %263  ;;  %v440_v55 = vsel %vm427_vm3, %v295_v38, %v419_v41 }
  0xce   :  { %v271_v46 = vsel %vm267_vm7, %v266_v43, %v260_v29  ;;  %v268_v47 = vsel %vm267_vm7, %v264_v44, %v266_v43  ;;  %v269_v48 = vsel %vm267_vm7, %v262_v28, %v264_v44  ;;  %v835_v7 = vpack.c.bf16 %v440_v55, %v436_v3  ;;  %p922_p5 = por %p921_p4, %p920_p3 }
  0xcf   :  { %v298_v50 = vmul.f32 %v290_v33, %v271_v46  ;;  %v296_v51 = vmul.f32 %v282_v34, %v269_v48  ;;  %v297_v52 = vmul.f32 %v286_v35, %v268_v47 }
  0xd0   :  { %p923_p6 = pnand %p922_p5, %p916_p2 }
  0xd1   :  { %v342_v56 = vpop.permute.xlu1 %341  ;;  %v340_v58 = vpop.permute.xlu0 %339  ;;  %v441_v59 = vsel %vm427_vm3, %v296_v51, %v420_v45  ;;  %v443_v60 = vsel %vm427_vm3, %v298_v50, %v422_v42  ;;  %v442_v62 = vsel %vm427_vm3, %v297_v52, %v421_v49 }
  0xd2   :  { %v833_v63 = vpack.c.bf16 %v441_v59, %v437_v53  ;;  %v841_v5 = vpack.c.bf16 %v443_v60, %v439_v54  ;;  %v843_v2 = vpack.c.bf16 %v442_v62, %v438_v61  ;;  %v350_v0 = vsel %vm347_vm8, %v340_v58, %v342_v56 }
  0xd3   :  { %v375_v14 = vmul.f32 %v358_v10, %v350_v0 }
  0xd4   :  { %834 = vmatprep.subr.bf16.mxu0 %v833_v63  ;;  %842 = vmatprep.subr.bf16.mxu1 %v841_v5 }
  0xd5   :  { %v346_v11 = vpop.permute.xlu1 %345  ;;  %836 = vmatpush1.bf16.msra.mxu0 %v835_v7  ;;  %844 = vmatpush1.bf16.msra.mxu1 %v843_v2  ;;  %v344_v12 = vpop.permute.xlu0 %343 }
  0xd6   :  { %v351_v1 = vsel %vm347_vm8, %v346_v11, %v340_v58  ;;  %v348_v17 = vsel %vm347_vm8, %v344_v12, %v346_v11  ;;  %v349_v19 = vsel %vm347_vm8, %v342_v56, %v344_v12 }
  0xd7   :  { %v378_v20 = vmul.f32 %v370_v6, %v351_v1  ;;  %v376_v16 = vmul.f32 %v362_v8, %v349_v19  ;;  %v377_v13 = vmul.f32 %v366_v9, %v348_v17 }
  0xd9   :  { %817 = vmatprep.subr.msk.mxu0 %vm427_vm3, %v376_v16  ;;  %820 = vmatprep.subr.msk.mxu1 %vm427_vm3, %v378_v20 }
  0xda   :  { %818 = vmatpush1.msk.msra.mxu0 %vm427_vm3, %v375_v14  ;;  %821 = vmatpush1.msk.msra.mxu1 %vm427_vm3, %v377_v13 }
  0xdb   :  { %819 = vmatmul.mubr.msk.f32.vlgmr.msra.gmra.mrb[0].mxu0 %vm451_vm9, %v444_v18  ;;  %822 = vmatmul.mubr.msk.f32.vlgmr.msra.gmra.mrb[0].mxu1 %vm451_vm9, %v444_v18 }
  0xdc   :  { %697 = vmatprep.mubr.f32.mxu0 %v953_v4  ;;  %768 = vmatprep.mubr.f32.mxu1 %v953_v4 }
  0xe6   :  { %v449_v21 = vpop.permute.xlu0 %448  ;;  %v614_v4 = vpop.permute.xlu1 %613 }
 0x1ae   :  { %v533_v22 = vpop.f32.mrb[0].mxu0  ;;  %v604_v23 = vpop.f32.mrb[0].mxu1 }
 0x1af   :  { %v535_v24 = vpop.f32.mrb[1].mxu0  ;;  %v606_v25 = vpop.f32.mrb[1].mxu1  ;;  %v534_v28 = vadd.f32 %v533_v22, %v449_v21  ;;  %v605_v29 = vadd.f32 %v604_v23, %v449_v21 }
 0x1b0   :  { %v536_v26 = vadd.f32 %v535_v24, %v449_v21  ;;  %v607_v27 = vadd.f32 %v606_v25, %v449_v21 }
 0x1b2   :  { %823 = vmatprep.subr.msk.mxu0 %vm620_vm10, %v536_v26  ;;  %826 = vmatprep.subr.msk.mxu1 %vm620_vm10, %v607_v27 }
 0x1b3   :  { %824 = vmatpush1.msk.msra.mxu0 %vm620_vm10, %v534_v28  ;;  %827 = vmatpush1.msk.msra.mxu1 %vm620_vm10, %v605_v29 }
 0x1b4   :  { %825 = vmatmul.mubr.msk.f32.vlgmr.msra.gmra.mrb[2].mxu0 %vm616_vm11, %v609_v30  ;;  %828 = vmatmul.mubr.msk.f32.vlgmr.msra.gmra.mrb[2].mxu1 %vm616_vm11, %v609_v30 }
 0x287   :  { %v699_v31 = vpop.f32.mrb[2].mxu0  ;;  %v770_v32 = vpop.f32.mrb[2].mxu1 }
 0x288   :  { %v700_v33 = vadd.f32 %v699_v31, %v614_v4  ;;  %v771_v34 = vadd.f32 %v770_v32, %v614_v4  ;;  %v701_v35 = vpop.f32.mrb[3].mxu0  ;;  %v772_v36 = vpop.f32.mrb[3].mxu1 }
 0x289   :  { %v702_v37 = vadd.f32 %v701_v35, %v614_v4  ;;  %v773_v38 = vadd.f32 %v772_v36, %v614_v4 }
 0x28a   :  { %v775_v39 = vmul.f32 0.5, %v700_v33  ;;  %v777_v40 = vmul.f32 0.5, %v771_v34 }
 0x28b   :  { %v776_v41 = vmul.f32 0.5, %v702_v37  ;;  %v778_v42 = vmul.f32 0.5, %v773_v38 }
 0x28c   :  { %863 = vtanh.f32 %v775_v39 }
 0x28d   :  { %865 = vtanh.f32 %v777_v40 }
 0x28e   :  { %867 = vtanh.f32 %v776_v41 }
 0x28f   :  { %869 = vtanh.f32 %v778_v42 }
 0x296   :  { %v864_v43 = vpop.eup %863 }
 0x297   :  { %v866_v44 = vpop.eup %865  ;;  %v783_v45 = vmul.f32 0.5, %v864_v43 }
 0x298   :  { %v868_v46 = vpop.eup %867  ;;  %v785_v47 = vmul.f32 0.5, %v866_v44 }
 0x299   :  { %v870_v48 = vpop.eup %869  ;;  %v784_v49 = vmul.f32 0.5, %v868_v46  ;;  %v787_v50 = vadd.f32 0.5, %v783_v45 }
 0x29a   :  { %v786_v51 = vmul.f32 0.5, %v870_v48  ;;  %v789_v52 = vadd.f32 0.5, %v785_v47 }
 0x29b   :  { %v788_v53 = vadd.f32 0.5, %v784_v49 }
 0x29c   :  { %v790_v54 = vadd.f32 0.5, %v786_v51 }
 0x29d   :  { %v795_v55 = vcombine.low %v787_v50, %v788_v53 }
 0x29e   :  { %v796_v56 = vcombine.low %v789_v52, %v790_v54 }
 0x29f   :  { %799 = vst [vmem:[#allocation7] sm:$0xff] %v795_v55 }
 0x2a0   :  { %800 = vst [vmem:[#allocation7 + $0x8] sm:$0xff] %v796_v56 }
 0x2a1   :  { %926 = shalt.err (!%p923_p6)
}
 0x2a2   :  { %s927_s13 = scalar_lea.hbm %s1231_s6, 256 }
 0x2a3   :  { %p928_p7 = scmp.ne.s32.totalorder %s1231_s6, %s927_s13  ;;  %p931_p8 = scmp.lt.u32.totalorder %s927_s13, %s1231_s6 }
 0x2a5   :  { %p933_p9 = pnand %p931_p8, %p928_p7 }
 0x2a7   :  { %936 = shalt.err (!%p933_p9)
}
 0x2a8   :  { %810 = dma.vmem_to_hbm [thread:$0]  %s808_s5, 256, %s1231_s6, [#allocation4]  }
 0x2a9   :  { %941 = dma.done.wait [#allocation4], 256  }
 0x2aa   :  { %942 = vsyncadd [#allocation4], 4294967040 }
 0x2ab   :  { %814 = vsyncpa [#allocation3], 1 }
 0x2ac   :  { %815 = vsyncpa [#allocation6], 1 }
 0x2ad   :  { %816 = vsyncpa [#allocation4], 1 }

</bundles_post_ra>
